<compile_context>
chip_gen: v7x
topology: tpu7x:2x2x1
jax: 0.10.0
libtpu: 0.0.40
codegen_flags: <defaults>
</compile_context>

<pallas_src>
import functools

import jax
import jax.numpy as jnp
import numpy as np
from jax.experimental import pallas as pl
from jax.experimental.pallas import tpu as pltpu


def _round_up(x: int, m: int) -> int:
    return ((x + m - 1) // m) * m


def _pick_tile_n(n: int, c: int, itemsize: int) -> int:
    """Rows per tile: big enough to hit the HBM roofline, small enough that a
    double-buffered logits tile stays well under scoped VMEM on all gens."""
    budget_per_buffer = 6 * 1024 * 1024           # ~6 MiB/buffer (x2 double-buffer)
    max_rows = max(8, budget_per_buffer // max(1, c * itemsize))
    tile = 512                                    # measured sweet spot for streaming f32
    while tile > max_rows and tile > 8:
        tile //= 2
    n_pad8 = _round_up(n, 8)
    if n_pad8 < tile:
        tile = n_pad8                             # small problems: one tile
    return tile


def _focal_rows(x, t, *, gamma: float, tile_n: int, n_valid: int, row0):
    """Per-row focal loss for one (tile_n, C) tile, padded rows zeroed."""
    x = x.astype(jnp.float32)                                   # (T, C)
    # Numerically stable logsumexp.
    m = jnp.max(x, axis=-1, keepdims=True)                      # (T, 1)
    lse = jnp.log(jnp.sum(jnp.exp(x - m), axis=-1, keepdims=True)) + m

    # Gather target logit via lane compare + reduce (XLU slot, not VALU).
    col = jax.lax.broadcasted_iota(jnp.int32, x.shape, 1)       # (T, C)
    tgt = jnp.sum(jnp.where(col == t, x, jnp.zeros_like(x)),
                  axis=-1, keepdims=True)                       # (T, 1)

    ce = jnp.maximum(lse - tgt, 0.0)                            # clamp rounding negatives
    pt = jnp.exp(-ce)
    w = 1.0 - pt                                                # >= 0 by construction

    g = float(gamma)
    if g == 0.0:
        weight = jnp.ones_like(w)
    elif g.is_integer() and 1 <= int(g) <= 8:
        weight = w
        for _ in range(int(g) - 1):                             # gamma=2 -> one extra mul
            weight = weight * w
    else:
        weight = w ** g                                         # non-integer fallback
    focal = weight * ce                                         # (T, 1)

    # Mask rows that belong to the zero-padded tail.
    row = row0 + jax.lax.broadcasted_iota(jnp.int32, (tile_n, 1), 0)
    return jnp.where(row < n_valid, focal, jnp.zeros_like(focal))


def _focal_partial_kernel(logits_ref, targets_ref, partial_ref,
                          *, gamma: float, tile_n: int, n_valid: int):
    # logits_ref : (tile_n, C)   targets_ref: (tile_n, 1) int32
    # partial_ref: (1, 8, 128) f32 -- lane-dense per-tile partial sum (splat).
    row0 = pl.program_id(0) * tile_n
    focal = _focal_rows(logits_ref[...], targets_ref[...],
                        gamma=gamma, tile_n=tile_n, n_valid=n_valid, row0=row0)
    tile_sum = jnp.sum(focal)
    partial_ref[...] = jnp.broadcast_to(tile_sum, partial_ref.shape).astype(jnp.float32)


def _focal_none_kernel(logits_ref, targets_ref, out_ref,
                       *, gamma: float, tile_n: int, n_valid: int):
    # out_ref: (tile_n, 1) per-sample focal loss.
    row0 = pl.program_id(0) * tile_n
    out_ref[...] = _focal_rows(logits_ref[...], targets_ref[...],
                               gamma=gamma, tile_n=tile_n, n_valid=n_valid, row0=row0)


def focal_loss(logits, targets, gamma: float = 2.0, reduction: str = "mean"):
    """Pallas TPU implementation of FocalLoss.forward.

    logits : (N, C) float array (f32 or bf16 -- read at native width, upcast in-kernel)
    targets: (N,)   integer class indices
    """
    N, C = logits.shape
    itemsize = jnp.dtype(logits.dtype).itemsize
    tile_n = _pick_tile_n(N, C, itemsize)
    n_pad = _round_up(N, tile_n)
    num_tiles = n_pad // tile_n

    targets2d = targets.astype(jnp.int32).reshape(N, 1)
    if n_pad != N:
        logits = jnp.pad(logits, ((0, n_pad - N), (0, 0)))
        targets2d = jnp.pad(targets2d, ((0, n_pad - N), (0, 0)))

    in_specs = [
        pl.BlockSpec((tile_n, C), lambda i: (i, 0)),
        pl.BlockSpec((tile_n, 1), lambda i: (i, 0)),
    ]
    compiler_params = pltpu.CompilerParams(
        dimension_semantics=("parallel",),          # no cross-tile carry -> megacore-friendly
        vmem_limit_bytes=32 * 1024 * 1024,
    )
    cost = pl.CostEstimate(
        flops=6 * N * C,
        transcendentals=N * C + 2 * N,
        bytes_accessed=N * C * itemsize + N * 4 + 4 * max(N, num_tiles * 8 * 128),
    )

    if reduction in ("mean", "sum"):
        kernel = functools.partial(_focal_partial_kernel, gamma=float(gamma),
                                   tile_n=tile_n, n_valid=N)
        partials = pl.pallas_call(
            kernel,
            out_shape=jax.ShapeDtypeStruct((num_tiles, 8, 128), jnp.float32),
            grid=(num_tiles,),
            in_specs=in_specs,
            out_specs=pl.BlockSpec((1, 8, 128), lambda i: (i, 0, 0)),
            compiler_params=compiler_params,
            cost_estimate=cost,
        )(logits, targets2d)
        total = jnp.sum(partials[:, 0, 0])
        if reduction == "mean":
            return total / jnp.float32(N)
        return total

    # reduction == 'none' (or anything else, matching the PyTorch `else` branch)
    kernel = functools.partial(_focal_none_kernel, gamma=float(gamma),
                               tile_n=tile_n, n_valid=N)
    per_sample = pl.pallas_call(
        kernel,
        out_shape=jax.ShapeDtypeStruct((n_pad, 1), jnp.float32),
        grid=(num_tiles,),
        in_specs=in_specs,
        out_specs=pl.BlockSpec((tile_n, 1), lambda i: (i, 0)),
        compiler_params=compiler_params,
        cost_estimate=cost,
    )(logits, targets2d)
    return per_sample[:N, 0]


def _focal_loss_ref(logits, targets, gamma=2.0, reduction="mean"):
    """Pure-JAX reference matching F.cross_entropy + focal weighting."""
    logp = jax.nn.log_softmax(logits.astype(jnp.float32), axis=-1)
    ce = -jnp.take_along_axis(logp, targets[:, None].astype(jnp.int32), axis=-1)[:, 0]
    pt = jnp.exp(-ce)
    fl = (1.0 - pt) ** gamma * ce
    if reduction == "mean":
        return fl.mean()
    if reduction == "sum":
        return fl.sum()
    return fl


if __name__ == "__main__":
    key = jax.random.PRNGKey(0)
    k1, k2, k3, k4 = jax.random.split(key, 4)

    # Small shapes consistent with the module: batch of 8 samples, 32 classes.
    N, C = 8, 32
    logits = jax.random.normal(k1, (N, C), dtype=jnp.float32)
    targets = jax.random.randint(k2, (N,), 0, C, dtype=jnp.int32)

    for red in ("mean", "sum", "none"):
        out = jax.block_until_ready(focal_loss(logits, targets, gamma=2.0, reduction=red))
        ref = _focal_loss_ref(logits, targets, gamma=2.0, reduction=red)
        np.testing.assert_allclose(np.asarray(out), np.asarray(ref), rtol=1e-5, atol=1e-5)

    # Non-multiple-of-tile batch to exercise the padding mask.
    N2 = 13
    logits2 = jax.random.normal(k3, (N2, C), dtype=jnp.float32)
    targets2 = jax.random.randint(k4, (N2,), 0, C, dtype=jnp.int32)
    out2 = jax.block_until_ready(focal_loss(logits2, targets2, gamma=2.0, reduction="mean"))
    ref2 = _focal_loss_ref(logits2, targets2, gamma=2.0, reduction="mean")
    np.testing.assert_allclose(np.asarray(out2), np.asarray(ref2), rtol=1e-5, atol=1e-5)

    print("KERNEL_OK")
</pallas_src>

<mosaic_0001>
module attributes {stable_mosaic.version = 11 : i64} {
  func.func @_focal_partial_kernel(%arg0: i32, %arg1: memref<8x32xf32, #tpu.memory_space<vmem>>, %arg2: memref<8x1xi32, #tpu.memory_space<vmem>>, %arg3: memref<1x8x128xf32, #tpu.memory_space<vmem>>) attributes {dimension_semantics = [#tpu.dimension_semantics<parallel>], iteration_bounds = array<i64: 1>, scalar_prefetch = 0 : i64, scratch_operands = 0 : i64, tpu.core_type = #tpu.core_type<tc>, window_params = [{transform_indices = @transform_0, window_bounds = array<i64: 8, 32>}, {transform_indices = @transform_1, window_bounds = array<i64: 8, 1>}, {transform_indices = @transform_2, window_bounds = array<i64: 1, 8, 128>}]} {
    %c8_i32 = arith.constant 8 : i32
    %0 = arith.muli %arg0, %c8_i32 : i32
    %c0 = arith.constant 0 : index
    %c0_0 = arith.constant 0 : index
    %1 = vector.load %arg1[%c0, %c0_0] : memref<8x32xf32, #tpu.memory_space<vmem>>, vector<8x32xf32>
    %c0_1 = arith.constant 0 : index
    %c0_2 = arith.constant 0 : index
    %2 = vector.load %arg2[%c0_1, %c0_2] : memref<8x1xi32, #tpu.memory_space<vmem>>, vector<8x1xi32>
    %cst = arith.constant dense<0xFF800000> : vector<8xf32>
    %3 = vector.multi_reduction <maximumf>, %1, %cst [1] : vector<8x32xf32> to vector<8xf32>
    %4 = vector.shape_cast %3 : vector<8xf32> to vector<8x1xf32>
    %5 = vector.broadcast %4 : vector<8x1xf32> to vector<8x32xf32>
    %6 = arith.subf %1, %5 : vector<8x32xf32>
    %7 = math.exp %6 : vector<8x32xf32>
    %cst_3 = arith.constant dense<0.000000e+00> : vector<8xf32>
    %8 = vector.multi_reduction <add>, %7, %cst_3 [1] : vector<8x32xf32> to vector<8xf32>
    %9 = vector.shape_cast %8 : vector<8xf32> to vector<8x1xf32>
    %10 = math.log %9 : vector<8x1xf32>
    %11 = arith.addf %10, %4 : vector<8x1xf32>
    %12 = tpu.iota {dimensions = array<i32: 1>} : vector<8x32xi32>
    %13 = vector.broadcast %2 : vector<8x1xi32> to vector<8x32xi32>
    %14 = arith.cmpi eq, %12, %13 : vector<8x32xi32>
    %cst_4 = arith.constant 0.000000e+00 : f32
    %15 = vector.broadcast %cst_4 : f32 to vector<8x32xf32>
    %16 = arith.select %14, %1, %15 : vector<8x32xi1>, vector<8x32xf32>
    %cst_5 = arith.constant dense<0.000000e+00> : vector<8xf32>
    %17 = vector.multi_reduction <add>, %16, %cst_5 [1] : vector<8x32xf32> to vector<8xf32>
    %18 = vector.shape_cast %17 : vector<8xf32> to vector<8x1xf32>
    %19 = arith.subf %11, %18 : vector<8x1xf32>
    %cst_6 = arith.constant 0.000000e+00 : f32
    %20 = vector.broadcast %cst_6 : f32 to vector<8x1xf32>
    %21 = arith.maximumf %19, %20 : vector<8x1xf32>
    %cst_7 = arith.constant 0.000000e+00 : f32
    %22 = vector.broadcast %cst_7 : f32 to vector<8x1xf32>
    %23 = arith.subf %22, %21 : vector<8x1xf32>
    %24 = math.exp %23 : vector<8x1xf32>
    %cst_8 = arith.constant 1.000000e+00 : f32
    %25 = vector.broadcast %cst_8 : f32 to vector<8x1xf32>
    %26 = arith.subf %25, %24 : vector<8x1xf32>
    %27 = arith.mulf %26, %26 : vector<8x1xf32>
    %28 = arith.mulf %27, %21 : vector<8x1xf32>
    %29 = tpu.iota {dimensions = array<i32: 0>} : vector<8x1xi32>
    %30 = vector.broadcast %0 : i32 to vector<8x1xi32>
    %31 = arith.addi %30, %29 : vector<8x1xi32>
    %c8_i32_9 = arith.constant 8 : i32
    %32 = vector.broadcast %c8_i32_9 : i32 to vector<8x1xi32>
    %33 = arith.cmpi slt, %31, %32 : vector<8x1xi32>
    %cst_10 = arith.constant 0.000000e+00 : f32
    %34 = vector.broadcast %cst_10 : f32 to vector<8x1xf32>
    %35 = arith.select %33, %28, %34 : vector<8x1xi1>, vector<8x1xf32>
    %36 = vector.shape_cast %35 : vector<8x1xf32> to vector<1x8x1xf32>
    %cst_11 = arith.constant dense<0.000000e+00> : vector<1xf32>
    %37 = vector.multi_reduction <add>, %36, %cst_11 [1, 2] : vector<1x8x1xf32> to vector<1xf32>
    %38 = vector.shape_cast %37 : vector<1xf32> to vector<1x1x1xf32>
    %39 = vector.extract %38[0, 0, 0] : f32 from vector<1x1x1xf32>
    %40 = vector.broadcast %39 : f32 to vector<1x8x128xf32>
    %c0_12 = arith.constant 0 : index
    %c0_13 = arith.constant 0 : index
    %c0_14 = arith.constant 0 : index
    %41 = vector.load %arg3[%c0_12, %c0_13, %c0_14] : memref<1x8x128xf32, #tpu.memory_space<vmem>>, vector<1x8x128xf32>
    tpu.vector_store %arg3[%c0_12, %c0_13, %c0_14], %40 {strides = array<i32>} : memref<1x8x128xf32, #tpu.memory_space<vmem>>, vector<1x8x128xf32>,
    return
  }
  func.func @transform_0(%arg0: i32) -> (i32, i32) {
    %c0_i32 = arith.constant 0 : i32
    %c0_i32_0 = arith.constant 0 : i32
    return %arg0, %c0_i32 : i32, i32
  }
  func.func @transform_1(%arg0: i32) -> (i32, i32) {
    %c0_i32 = arith.constant 0 : i32
    %c0_i32_0 = arith.constant 0 : i32
    return %arg0, %c0_i32 : i32, i32
  }
  func.func @transform_2(%arg0: i32) -> (i32, i32, i32) {
    %c0_i32 = arith.constant 0 : i32
    %c0_i32_0 = arith.constant 0 : i32
    %c0_i32_1 = arith.constant 0 : i32
    return %arg0, %c0_i32, %c0_i32_0 : i32, i32, i32
  }
}

</mosaic_0001>

<bundles_post_ra>
// kernel: tpu_custom_call.1
= control target key start
LH: loop header
LB: loop body
LE: loop exit
PB: predicated region body
PF: predicated region fallthrough
CT: control target
= control target key end

     0   :  { %vm15_vm0 = vcmask 261120   ;;  %s152_s0 = inlined_call_operand.vmem [shape: f32[8,32], index: 0, kind: input, shape index: {}]   ;;  %s153_s1 = inlined_call_operand.vmem [shape: s32[8,1], index: 1, kind: input, shape index: {}]   ;;  %s154_s2 = inlined_call_operand.hbm [shape: f32[1,8,128], index: 2, kind: output, shape index: {}]  }
   0x1   :  { %v13_v0 = vld [vmem:[%s152_s0] sm:$0xff] }
   0x2   :  { %7 = vsyncpa [#allocation3], 0  ;;  %v16_v1 = vsel %vm15_vm0, %v13_v0, -inf  ;;  %v114_v2 = vmov 0   ;;  %v14_v3 = vld [vmem:[%s153_s1] sm:$0xff]  ;;  %v28_v7 = vlaneseq  ;;  %vm52_vm2 = vcmask 7168  }
   0x3   :  { %83 = vset.pattern.permute.xlu0 %v114_v2  ;;  %s115_s0 = smov [#allocation2]  }
   0x4   :  { %17 = vmax.xlane.f32.xlu0 %v16_v1  ;;  %v29_v8 = vand.u32 127, %v28_v7  ;;  %s71_s1 = sshll.u32 %s115_s0, 4  ;;  %s72_s1 = int_to_ptr.vmem [resolvable:$true] %s71_s1 }
   0x5   :  { %s90_s14 = scalar_lea.vmem %s72_s1, 128  ;;  %p95_p1 = scmp.lt.s32.totalorder %s72_s1, %s72_s1 }
   0x6   :  { %p91_p0 = scmp.ne.s32.totalorder %s72_s1, %s90_s14  ;;  %p96_p2 = scmp.lt.s32.totalorder %s90_s14, %s90_s14 }
   0x8   :  { %p97_p3 = por %p96_p2, %p95_p1 }
   0xa   :  { %p98_p4 = pnand %p97_p3, %p91_p0 }
  0x1a   :  { %31 = vperm.xlu0 %83, %v14_v3  }
  0x91   :  { %v18_v4 = vpop.xlane.xlu0 %17 }
  0x92   :  { %v19_v5 = vsub.f32 %v13_v0, %v18_v4 }
  0x94   :  { %v20_v6 = vmul.f32 1.442695, %v19_v5 }
  0x96   :  { %84 = vpow2.f32 %v20_v6 }
  0x99   :  { %v32_v9 = vpop.permute.xlu0 %31 }
  0x9a   :  { %vm33_vm1 = vcmp.eq.s32.totalorder %v29_v8, %v32_v9 }
  0x9b   :  { %v34_v11 = vsel %vm33_vm1, %v13_v0, 0.0 }
  0x9c   :  { %v35_v13 = vsel %vm15_vm0, %v34_v11, 0.0 }
  0xa0   :  { %v85_v10 = vpop.eup %84 }
  0xa1   :  { %v22_v12 = vsel %vm15_vm0, %v85_v10, 0.0 }
  0xa2   :  { %23 = vadd.xlane.f32.xlu1 %v22_v12 }
  0xa6   :  { %36 = vadd.xlane.f32.xlu1 %v35_v13 }
 0x12f   :  { %v24_v14 = vpop.xlane.xlu1 %23 }
 0x130   :  { %86 = vlog2.f32 %v24_v14 }
 0x133   :  { %v37_v17 = vpop.xlane.xlu1 %36 }
 0x13a   :  { %v87_v15 = vpop.eup %86 }
 0x13b   :  { %v26_v16 = vmul.f32 0.6931472, %v87_v15 }
 0x13d   :  { %v27_v18 = vadd.f32 %v26_v16, %v18_v4 }
 0x13f   :  { %v38_v19 = vsub.f32 %v27_v18, %v37_v17 }
 0x141   :  { %v39_v20 = vmax.f32 %v38_v19, 0.0 }
 0x143   :  { %v40_v21 = vsub.f32 0.0, %v39_v20 }
 0x145   :  { %v41_v22 = vmul.f32 1.442695, %v40_v21 }
 0x147   :  { %88 = vpow2.f32 %v41_v22 }
 0x151   :  { %v89_v23 = vpop.eup %88 }
 0x152   :  { %v43_v24 = vsub.f32 1.0, %v89_v23 }
 0x154   :  { %v44_v25 = vmul.f32 %v43_v24, %v43_v24 }
 0x156   :  { %v45_v26 = vmul.f32 %v44_v25, %v39_v20 }
 0x158   :  { %v53_v27 = vsel %vm52_vm2, %v45_v26, 0.0 }
 0x159   :  { %54 = vadd.xlane.f32.xlu1 %v53_v27 }
 0x1e6   :  { %v55_v28 = vpop.xlane.xlu1 %54 }
 0x1e7   :  { %v56_v29 = vrot.slane %v55_v28, 4 }
 0x1e9   :  { %v57_v30 = vadd.f32 %v56_v29, %v55_v28 }
 0x1eb   :  { %v58_v31 = vrot.slane %v57_v30, 2 }
 0x1ed   :  { %v59_v32 = vadd.f32 %v58_v31, %v57_v30 }
 0x1ef   :  { %v60_v33 = vrot.slane %v59_v32, 1 }
 0x1f1   :  { %v61_v34 = vadd.f32 %v60_v33, %v59_v32 }
 0x1f3   :  { %79 = vpush %v61_v34 }
 0x224   :  { %s80_s13 = spop %79 }
 0x225   :  { %v63_v35 = vstv %s80_s13 }
 0x226   :  { %64 = vst [vmem:[#allocation2] sm:$0xff] %v63_v35 }
 0x227   :  { %101 = shalt.err (!%p98_p4)
}
 0x228   :  { %s102_s17 = scalar_lea.hbm %s154_s2, 128 }
 0x229   :  { %p103_p5 = scmp.ne.s32.totalorder %s154_s2, %s102_s17  ;;  %p106_p6 = scmp.lt.u32.totalorder %s102_s17, %s154_s2 }
 0x22b   :  { %p108_p7 = pnand %p106_p6, %p103_p5 }
 0x22d   :  { %111 = shalt.err (!%p108_p7)
}
 0x22e   :  { %74 = dma.vmem_to_hbm [thread:$0]  %s72_s1, 128, %s154_s2, [#allocation3]  }
 0x22f   :  { %112 = dma.done.wait [#allocation3], 128  }
 0x230   :  { %113 = vsyncadd [#allocation3], 4294967168 }
 0x231   :  { %78 = vsyncpa [#allocation3], 1 }

</bundles_post_ra>
